<compile_context>
chip_gen: v5e
topology: v5e:2x2
jax: 0.10.0
libtpu: 0.0.40
codegen_flags: <defaults>
</compile_context>

<pallas_src>
import math

import jax
import jax.numpy as jnp
from jax import lax
from jax.experimental import pallas as pl
from jax.experimental.pallas import tpu as pltpu

_LANES = 128
_SUBLANES = 8
_CHUNK_ROWS = 256            # per-chunk working set: 2 x (256,128) f32 loads
_NUM_SPLITS = 2              # leading 'parallel' grid axis (2 TCs on v7x)
_TARGET_TILE_BYTES = 2 << 20  # ~2 MiB per input per pipeline buffer
_PIPELINE_BUFFERS = 3        # preferred input pipeline depth (review item)

_buffered_ok = {"value": None}  # cache: does this build accept pipeline_mode?


def _default_max_tile_rows(itemsize):
    """Rows per tile targeting ~2 MiB per input buffer (4096 f32 / 8192 bf16)."""
    rows = _TARGET_TILE_BYTES // (_LANES * itemsize)
    return max(_CHUNK_ROWS, (rows // _CHUNK_ROWS) * _CHUNK_ROWS)


def _make_partial_sum_kernel(*, tile_rows, chunk_rows, tiles_per_split,
                             rows_valid, need_mask):
    """Kernel: accumulate per-lane sums of (yt - yp)^2 into an (8,128) output block."""
    n_chunks = tile_rows // chunk_rows
    groups = chunk_rows // _SUBLANES

    def kernel(yt_ref, yp_ref, out_ref):
        p = pl.program_id(0)   # parallel split (megacore on v7x)
        r = pl.program_id(1)   # reduction over row tiles within the split

        @pl.when(r == 0)
        def _init():
            out_ref[...] = jnp.zeros_like(out_ref)

        if need_mask:
            # Mask is derived from the *assigned* tile index (not the clamped
            # DMA index), so out-of-range / partial tiles contribute exactly 0
            # and no row is ever counted twice.
            base_row = (p * tiles_per_split + r) * tile_rows
            row_local = lax.broadcasted_iota(jnp.int32, (chunk_rows, _LANES), 0)

        part = jnp.zeros((_SUBLANES, _LANES), jnp.float32)
        for c in range(n_chunks):          # static offsets -> aligned vector loads
            off = c * chunk_rows
            dy = (yt_ref[pl.ds(off, chunk_rows), :].astype(jnp.float32)
                  - yp_ref[pl.ds(off, chunk_rows), :].astype(jnp.float32))
            sq = dy * dy
            if need_mask:
                sq = jnp.where(row_local < rows_valid - base_row - off, sq, 0.0)
            # (chunk_rows,128) -> (groups,8,128) groups exactly along vreg tiles;
            # the sum over axis 0 is pure VPU adds (no XLU).
            part = part + jnp.sum(sq.reshape(groups, _SUBLANES, _LANES), axis=0)
        out_ref[...] += part

    return kernel


def _pallas_partial_sums(yt2, yp2, *, kernel, grid, tile_rows, tiles_per_split,
                         total_tiles, numel, itemsize):
    def in_index(p, r):
        # Clamp so fully-out-of-range assignments (odd tile counts / tiny
        # inputs) DMA a valid block; their contribution is masked to zero.
        return (jnp.minimum(p * tiles_per_split + r, total_tiles - 1), 0)

    def out_index(p, r):
        return (p, 0)

    def build(buffer_count):
        spec_kwargs = {}
        if buffer_count is not None:
            spec_kwargs["pipeline_mode"] = pl.Buffered(buffer_count)

        def big_spec():
            return pl.BlockSpec((tile_rows, _LANES), in_index, **spec_kwargs)

        return pl.pallas_call(
            kernel,
            out_shape=jax.ShapeDtypeStruct(
                (_NUM_SPLITS * _SUBLANES, _LANES), jnp.float32),
            grid_spec=pltpu.PrefetchScalarGridSpec(
                num_scalar_prefetch=0,
                grid=grid,
                in_specs=[big_spec(), big_spec()],
                out_specs=pl.BlockSpec((_SUBLANES, _LANES), out_index),
            ),
            compiler_params=pltpu.CompilerParams(
                dimension_semantics=("parallel", "arbitrary"),
                vmem_limit_bytes=32 << 20,
            ),
            cost_estimate=pl.CostEstimate(
                flops=3 * numel,
                transcendentals=0,
                bytes_accessed=2 * numel * itemsize
                + _NUM_SPLITS * _SUBLANES * _LANES * 4,
            ),
        )

    if _buffered_ok["value"] is not False:
        try:
            out = build(_PIPELINE_BUFFERS)(yt2, yp2)
            _buffered_ok["value"] = True
            return out
        except Exception:
            # pipeline_mode / Buffered not supported by this build: fall back
            # to the default double-buffered pipeline (still correct & fast).
            _buffered_ok["value"] = False
    return build(None)(yt2, yp2)


def init_mse(Y_true, Y_pred, init_pred, R0=-2.0, J0=3.0, init_weight=1.0,
             *, max_tile_rows=None):
    """Pallas implementation of InitMSE.forward. Returns a scalar float32."""
    assert Y_true.shape == Y_pred.shape
    assert Y_true.dtype == Y_pred.dtype
    numel = int(math.prod(Y_true.shape))
    itemsize = jnp.dtype(Y_true.dtype).itemsize

    yt = Y_true.reshape(-1)
    yp = Y_pred.reshape(-1)

    # Lane-dense (rows, 128) slab.  When 128 | numel this reshape is a bitcast
    # (zero extra HBM traffic).  Otherwise pad by < 128 zeros only; the padded
    # diff is exactly 0 and the divisor stays 1/numel.
    pad = (-numel) % _LANES
    if pad:
        yt = jnp.pad(yt, (0, pad))
        yp = jnp.pad(yp, (0, pad))
    rows = (numel + pad) // _LANES
    yt2 = yt.reshape(rows, _LANES)
    yp2 = yp.reshape(rows, _LANES)

    if max_tile_rows is None:
        max_tile_rows = _default_max_tile_rows(itemsize)
    max_tile_rows = max(_CHUNK_ROWS, (max_tile_rows // _CHUNK_ROWS) * _CHUNK_ROWS)
    tile_rows = min(max_tile_rows, pl.cdiv(rows, _CHUNK_ROWS) * _CHUNK_ROWS)
    total_tiles = pl.cdiv(rows, tile_rows)
    tiles_per_split = pl.cdiv(total_tiles, _NUM_SPLITS)
    # Mask only when the (split x tile) coverage exceeds the real row count.
    need_mask = (_NUM_SPLITS * tiles_per_split * tile_rows) != rows

    kernel = _make_partial_sum_kernel(
        tile_rows=tile_rows, chunk_rows=_CHUNK_ROWS,
        tiles_per_split=tiles_per_split, rows_valid=rows, need_mask=need_mask)

    partials = _pallas_partial_sums(
        yt2, yp2, kernel=kernel, grid=(_NUM_SPLITS, tiles_per_split),
        tile_rows=tile_rows, tiles_per_split=tiles_per_split,
        total_tiles=total_tiles, numel=numel, itemsize=itemsize)

    mse_y = jnp.sum(partials) / numel

    # Tiny (B,2) init term computed in the wrapper (negligible O(B*2) work),
    # matching nn.MSELoss broadcast-mean semantics.
    init_values = jnp.array([[R0, J0]], dtype=jnp.float32)
    init_pred_f32 = jnp.asarray(init_pred).astype(jnp.float32)
    mse_i = jnp.mean((init_values - init_pred_f32) ** 2)

    return init_weight * mse_i + mse_y


def init_mse_ref(Y_true, Y_pred, init_pred, R0=-2.0, J0=3.0, init_weight=1.0):
    init_values = jnp.array([[R0, J0]], dtype=jnp.float32)
    mse_i = jnp.mean((init_values - init_pred.astype(jnp.float32)) ** 2)
    mse_y = jnp.mean(
        (Y_true.astype(jnp.float32) - Y_pred.astype(jnp.float32)) ** 2)
    return init_weight * mse_i + mse_y


if __name__ == "__main__":
    key = jax.random.PRNGKey(0)
    k1, k2, k3 = jax.random.split(key, 3)

    def check(yt, yp, ip, msg, **kw):
        ref_kw = {k: v for k, v in kw.items() if k != "max_tile_rows"}
        got = jax.block_until_ready(init_mse(yt, yp, ip, **kw))
        ref = init_mse_ref(yt, yp, ip, **ref_kw)
        assert jnp.allclose(got, ref, rtol=1e-5, atol=1e-5), (msg, got, ref)

    # NCHW predictions, small shapes; init_pred is (B, 2).
    B, C, H, W = 2, 4, 16, 16
    y_true = jax.random.normal(k1, (B, C, H, W), dtype=jnp.float32)
    y_pred = jax.random.normal(k2, (B, C, H, W), dtype=jnp.float32)
    init_pred = jax.random.normal(k3, (B, 2), dtype=jnp.float32)

    # 1) Aligned numel (128 | numel): zero-copy path, masked partial tile.
    check(y_true, y_pred, init_pred, "base f32")

    # 2) Ragged numel (not a multiple of 128) + non-default loss params.
    ya = jax.random.normal(k1, (2, 3, 5, 7), dtype=jnp.float32)
    yb = jax.random.normal(k2, (2, 3, 5, 7), dtype=jnp.float32)
    check(ya, yb, init_pred, "ragged f32", R0=1.5, J0=-0.5, init_weight=0.5)

    # 3) bf16 inputs: no wrapper upcast, in-kernel cast to f32.
    check(y_true.astype(jnp.bfloat16), y_pred.astype(jnp.bfloat16), init_pred,
          "bf16")

    # 4) Multi-tile path across both parallel splits (small max_tile_rows
    #    override): rows=1024, 4 tiles, 2 per split, no masking needed.
    yc = jax.random.normal(k1, (2, 4, 128, 128), dtype=jnp.float32)
    yd = jax.random.normal(k2, (2, 4, 128, 128), dtype=jnp.float32)
    check(yc, yd, init_pred, "multi-tile", max_tile_rows=256)

    # 5) Multi-tile + ragged rows: partial edge tile exercises the row mask.
    ye = jax.random.normal(k1, (2, 4, 127, 128), dtype=jnp.float32)
    yf = jax.random.normal(k2, (2, 4, 127, 128), dtype=jnp.float32)
    check(ye, yf, init_pred, "multi-tile ragged", max_tile_rows=256)

    print("KERNEL_OK")
</pallas_src>

<mosaic_0001>
module attributes {stable_mosaic.version = 11 : i64} {
  func.func @kernel(%arg0: i32, %arg1: i32, %arg2: memref<256x128xf32, #tpu.memory_space<vmem>>, %arg3: memref<256x128xf32, #tpu.memory_space<vmem>>, %arg4: memref<8x128xf32, #tpu.memory_space<vmem>>) attributes {dimension_semantics = [#tpu.dimension_semantics<parallel>, #tpu.dimension_semantics<arbitrary>], iteration_bounds = array<i64: 2, 1>, scalar_prefetch = 0 : i64, scratch_operands = 0 : i64, tpu.core_type = #tpu.core_type<tc>, window_params = [{transform_indices = @transform_0, window_bounds = array<i64: 256, 128>}, {transform_indices = @transform_1, window_bounds = array<i64: 256, 128>}, {transform_indices = @transform_2, window_bounds = array<i64: 8, 128>}]} {
    %c0_i32 = arith.constant 0 : i32
    %0 = arith.cmpi eq, %arg1, %c0_i32 : i32
    %1 = arith.extui %0 : i1 to i32
    %c0_i32_0 = arith.constant 0 : i32
    %2 = arith.cmpi ne, %1, %c0_i32_0 : i32
    scf.if %2 {
      %cst_11 = arith.constant 0.000000e+00 : f32
      %24 = vector.broadcast %cst_11 : f32 to vector<8x128xf32>
      %c0_12 = arith.constant 0 : index
      %c0_13 = arith.constant 0 : index
      %25 = vector.load %arg4[%c0_12, %c0_13] : memref<8x128xf32, #tpu.memory_space<vmem>>, vector<8x128xf32>
      tpu.vector_store %arg4[%c0_12, %c0_13], %24 {strides = array<i32>} : memref<8x128xf32, #tpu.memory_space<vmem>>, vector<8x128xf32>,
    } else {
    }
    %c1_i32 = arith.constant 1 : i32
    %3 = arith.muli %arg0, %c1_i32 : i32
    %4 = arith.addi %3, %arg1 : i32
    %c256_i32 = arith.constant 256 : i32
    %5 = arith.muli %4, %c256_i32 : i32
    %6 = tpu.iota {dimensions = array<i32: 0>} : vector<256x128xi32>
    %cst = arith.constant 0.000000e+00 : f32
    %7 = vector.broadcast %cst : f32 to vector<8x128xf32>
    %c0 = arith.constant 0 : index
    %c0_1 = arith.constant 0 : index
    %8 = vector.load %arg2[%c0, %c0_1] : memref<256x128xf32, #tpu.memory_space<vmem>>, vector<256x128xf32>
    %c0_2 = arith.constant 0 : index
    %c0_3 = arith.constant 0 : index
    %9 = vector.load %arg3[%c0_2, %c0_3] : memref<256x128xf32, #tpu.memory_space<vmem>>, vector<256x128xf32>
    %10 = arith.subf %8, %9 : vector<256x128xf32>
    %11 = arith.mulf %10, %10 : vector<256x128xf32>
    %c16_i32 = arith.constant 16 : i32
    %12 = arith.subi %c16_i32, %5 : i32
    %c0_i32_4 = arith.constant 0 : i32
    %13 = arith.subi %12, %c0_i32_4 : i32
    %14 = vector.broadcast %13 : i32 to vector<256x128xi32>
    %15 = arith.cmpi slt, %6, %14 : vector<256x128xi32>
    %cst_5 = arith.constant 0.000000e+00 : f32
    %16 = vector.broadcast %cst_5 : f32 to vector<256x128xf32>
    %17 = arith.select %15, %11, %16 : vector<256x128xi1>, vector<256x128xf32>
    %18 = vector.shape_cast %17 : vector<256x128xf32> to vector<32x8x128xf32>
    %cst_6 = arith.constant dense<0.000000e+00> : vector<8x128xf32>
    %19 = vector.multi_reduction <add>, %18, %cst_6 [0] : vector<32x8x128xf32> to vector<8x128xf32>
    %20 = arith.addf %7, %19 : vector<8x128xf32>
    %c0_7 = arith.constant 0 : index
    %c0_8 = arith.constant 0 : index
    %21 = vector.load %arg4[%c0_7, %c0_8] : memref<8x128xf32, #tpu.memory_space<vmem>>, vector<8x128xf32>
    %22 = arith.addf %21, %20 : vector<8x128xf32>
    %c0_9 = arith.constant 0 : index
    %c0_10 = arith.constant 0 : index
    %23 = vector.load %arg4[%c0_9, %c0_10] : memref<8x128xf32, #tpu.memory_space<vmem>>, vector<8x128xf32>
    tpu.vector_store %arg4[%c0_9, %c0_10], %22 {strides = array<i32>} : memref<8x128xf32, #tpu.memory_space<vmem>>, vector<8x128xf32>,
    return
  }
  func.func @transform_0(%arg0: i32, %arg1: i32) -> (i32, i32) {
    %c1_i32 = arith.constant 1 : i32
    %0 = arith.muli %arg0, %c1_i32 : i32
    %1 = arith.addi %0, %arg1 : i32
    %c0_i32 = arith.constant 0 : i32
    %2 = arith.minsi %1, %c0_i32 : i32
    %c0_i32_0 = arith.constant 0 : i32
    %c0_i32_1 = arith.constant 0 : i32
    return %2, %c0_i32_0 : i32, i32
  }
  func.func @transform_1(%arg0: i32, %arg1: i32) -> (i32, i32) {
    %c1_i32 = arith.constant 1 : i32
    %0 = arith.muli %arg0, %c1_i32 : i32
    %1 = arith.addi %0, %arg1 : i32
    %c0_i32 = arith.constant 0 : i32
    %2 = arith.minsi %1, %c0_i32 : i32
    %c0_i32_0 = arith.constant 0 : i32
    %c0_i32_1 = arith.constant 0 : i32
    return %2, %c0_i32_0 : i32, i32
  }
  func.func @transform_2(%arg0: i32, %arg1: i32) -> (i32, i32) {
    %c0_i32 = arith.constant 0 : i32
    %c0_i32_0 = arith.constant 0 : i32
    return %arg0, %c0_i32 : i32, i32
  }
}

</mosaic_0001>

<bundles_post_ra>
// kernel: tpu_custom_call.1
= control target key start
LH: loop header
LB: loop body
LE: loop exit
PB: predicated region body
PF: predicated region fallthrough
CT: control target
= control target key end

     0   :  { %7 = vsyncpa [#allocation3], 0  ;;  %s1253_s0 = inlined_call_operand.hbm [shape: f32[16,128], index: 0, kind: input, shape index: {}]   ;;  %s1254_s1 = inlined_call_operand.hbm [shape: f32[16,128], index: 1, kind: input, shape index: {}]   ;;  %s1255_s2 = inlined_call_operand.hbm [shape: f32[16,128], index: 2, kind: output, shape index: {}]  }
   0x1   :  { %9 = vsyncpa [#allocation3 + $0x1], 0 }
   0x2   :  { %10 = vsyncpa [#allocation6], 0 }
   0x3   :  { %12 = vsyncpa [#allocation6 + $0x1], 0 }
   0x4   :  { %13 = vsyncpa [#allocation4], 0 }
   0x5   :  { %15 = vsyncpa [#allocation4 + $0x1], 0  ;;  %s971_s9 = smov 0   ;;  %s973_s10 = smov 0  }
   0x6   :  { %s975_s11 = smov 0   ;;  %s977_s12 = smov 0  }
   0x7   :  { %s979_s13 = smov 0   ;;  %s981_s14 = smov 0  }
   0x8   :  { %s983_s15 = smov 0   ;;  %s985_s16 = smov 0  }
   0x9 LB: > { %s644_s17 = sadd.s32 4294967295, %s948_s16   ;;  %s645_s18 = sadd.s32 4294967294, %s948_s16   ;;  %s948_s16 = sphi %s985_s16, %s21_s16   ;;  %s944_s15 = sphi %s983_s15, %s1265_s15   ;;  %s940_s14 = sphi %s981_s14, %s1264_s14   ;;  %s936_s13 = sphi %s979_s13, %s1243_s13   ;;  %s932_s12 = sphi %s977_s12, %s1263_s12   ;;  %s928_s11 = sphi %s975_s11, %s1262_s11   ;;  %s924_s10 = sphi %s973_s10, %s1261_s10   ;;  %s920_s9 = sphi %s971_s9, %s1260_s9  }
   0xa   : > { %s33_s19 = sadd.s32 1, %s944_s15  ;;  %p917_p1 = scmp.ne.s32.totalorder %s936_s13, 0 }
   0xb   : > { %p35_p0 = scmp.ge.s32.totalorder %s33_s19, 2  ;;  %p54_p2 = scmp.eq.s32.totalorder %s948_s16, 0 }
   0xc   : > { %p59_p3 = scmp.ne.s32.totalorder %s936_s13, %s932_s12  ;;  %p60_p5 = scmp.eq.s32.totalorder %s644_s17, 0 }
   0xd   : > { %s1267_s19 = smov (%p35_p0, %s33_s19), 0  ;;  %p1017_p4 = por %p917_p1, %p54_p2 }
   0xe   : > { %p1021_p6 = por %p60_p5, %p59_p3  ;;  %s101_s22 = ssub.s32 %s944_s15, %s1267_s19 }
   0xf   : > { %p102_p7 = scmp.eq.s32.totalorder %s101_s22, 0  ;;  %s104_s23 = sadd.s32 1, %s928_s11 }
  0x10   : > { %p114_p8 = scmp.ne.s32.totalorder %s928_s11, %s924_s10  ;;  %p115_p9 = scmp.eq.s32.totalorder %s644_s17, 1 }
  0x11   : > { %s1029_s24 = scalar_select %p102_p7, %s928_s11, %s104_s23  }
  0x12   : > { %p120_p10 = scmp.ne.s32.totalorder %s924_s10, %s920_s9  ;;  %p121_p11 = scmp.eq.s32.totalorder %s645_s18, 1 }
  0x13   : > { %p1035_p12 = por %p115_p9, %p114_p8  ;;  %p647_p0 = scmp.ge.s32.totalorder %s948_s16, 2 }
  0x14   : > { %p1039_p13 = por %p121_p11, %p120_p10 }
  0x15   : > { %137 = sbr.rel (%p647_p0) target bundleno = 70 (0x46), region = 16 }
  0x1a   : > { %140 = sbr.rel (!%p1017_p4) target bundleno = 48 (0x30), region = 20 }
  0x1f   : > { %154 = vsyncadd [#allocation3], 3840  ;;  %s950_s27 = smov [#allocation2]   ;;  %s159_s3 = sshll.u32 %s1253_s0, 4  ;;  %s160_s3 = int_to_ptr.hbm [resolvable:$true] %s159_s3 }
  0x20   : > { %s161_s28 = sshll.u32 %s950_s27, 4  ;;  %s759_s4 = sshra.s32 %s160_s3, 4  ;;  %s162_s28 = int_to_ptr.vmem [resolvable:$true] %s161_s28  ;;  %s760_s4 = int_to_ptr.hbm [resolvable:$true] %s759_s4 }
  0x21   : > { %s766_s5 = scalar_lea.hbm %s760_s4, 16  ;;  %s770_s8 = scalar_lea.hbm %s1253_s0, 16 }
  0x22   : > { %p767_p1 = scmp.ne.s32.totalorder %s760_s4, %s766_s5  ;;  %p772_p2 = scmp.lt.s32.totalorder %s770_s8, %s766_s5 }
  0x24   : > { %p774_p3 = pnand %p772_p2, %p767_p1 }
  0x26   : > { %777 = shalt.err (!%p774_p3)
}
  0x27   : > { %s778_s12 = sshra.s32 %s162_s28, 4  ;;  %s789_s18 = scalar_lea.vmem %s950_s27, 512  ;;  %s779_s12 = int_to_ptr.vmem [resolvable:$true] %s778_s12 }
  0x28   : > { %s785_s17 = scalar_lea.vmem %s779_s12, 16 }
  0x29   : > { %p786_p5 = scmp.ne.s32.totalorder %s779_s12, %s785_s17  ;;  %p791_p7 = scmp.lt.s32.totalorder %s789_s18, %s785_s17 }
  0x2b   : > { %p793_p8 = pnand %p791_p7, %p786_p5 }
  0x2d   : > { %796 = shalt.err (!%p793_p8)
}
  0x2e   : > { %s951_s22 = smov 128   ;;  %s952_s23 = smov 8  }
  0x2f   : > { %167 = dma.hbm_to_vmem [thread:$0]  %s160_s3, 256, %s162_s28, [#allocation3], %s951_s22, %s951_s22, %s952_s23  }
  0x30 PF: > { %170 = sbr.rel (!%p1017_p4) target bundleno = 70 (0x46), region = 24 }
  0x35   : > { %184 = vsyncadd [#allocation6], 3840  ;;  %s953_s29 = smov [#allocation5]   ;;  %s189_s6 = sshll.u32 %s1254_s1, 4  ;;  %s190_s6 = int_to_ptr.hbm [resolvable:$true] %s189_s6 }
  0x36   : > { %s191_s30 = sshll.u32 %s953_s29, 4  ;;  %s798_s27 = sshra.s32 %s190_s6, 4  ;;  %s192_s30 = int_to_ptr.vmem [resolvable:$true] %s191_s30  ;;  %s799_s27 = int_to_ptr.hbm [resolvable:$true] %s798_s27 }
  0x37   : > { %s805_s7 = scalar_lea.hbm %s799_s27, 16  ;;  %s809_s28 = scalar_lea.hbm %s1254_s1, 16 }
  0x38   : > { %p806_p9 = scmp.ne.s32.totalorder %s799_s27, %s805_s7  ;;  %p811_p10 = scmp.lt.s32.totalorder %s809_s28, %s805_s7 }
  0x3a   : > { %p813_p11 = pnand %p811_p10, %p806_p9 }
  0x3c   : > { %816 = shalt.err (!%p813_p11)
}
  0x3d   : > { %s817_s20 = sshra.s32 %s192_s30, 4  ;;  %s828_s17 = scalar_lea.vmem %s953_s29, 512  ;;  %s818_s20 = int_to_ptr.vmem [resolvable:$true] %s817_s20 }
  0x3e   : > { %s824_s3 = scalar_lea.vmem %s818_s20, 16 }
  0x3f   : > { %p825_p4 = scmp.ne.s32.totalorder %s818_s20, %s824_s3  ;;  %p830_p1 = scmp.lt.s32.totalorder %s828_s17, %s824_s3 }
  0x41   : > { %p832_p2 = pnand %p830_p1, %p825_p4 }
  0x43   : > { %835 = shalt.err (!%p832_p2)
}
  0x44   : > { %s954_s18 = smov 128   ;;  %s955_s22 = smov 8  }
  0x45   : > { %197 = dma.hbm_to_vmem [thread:$0]  %s190_s6, 256, %s192_s30, [#allocation6], %s954_s18, %s954_s18, %s955_s22  }
  0x46 PF: > { %p662_p3 = scmp.ge.s32.totalorder %s948_s16, 1  ;;  %p199_p5 = scmp.lt.s32.totalorder %s948_s16, 3 }
  0x48   : > { %p200_p7 = pnand %p662_p3, %p199_p5 }
  0x49   : > { %s205_s23 = sand.u32 (!%p200_p7), 1, %s936_s13  }
  0x4a   : > { %203 = sbr.rel (%p200_p7) target bundleno = 156 (0x9c), region = 28  ;;  %s663_s4 = sshll.u32 (!%p200_p7), %s205_s23, 8 }
  0x4b   : > { %s206_s5 = scalar_lea.sflag (!%p200_p7), [#allocation3], %s205_s23  ;;  %s1065_s29 = scalar_lea.vmem (!%p200_p7), [#allocation2], %s663_s4 }
  0x4f   : > { %902 = dma.done.wait (%p1021_p6), %s206_s5, 4096  }
  0x50   : > { %904 = vsyncadd (%p1021_p6), %s206_s5, 4294963200  ;;  %s216_s30 = scalar_lea.sflag [#allocation6], %s205_s23  ;;  %s1071_s6 = scalar_lea.vmem [#allocation5], %s663_s4 }
  0x51   : > { %906 = dma.done.wait (%p1021_p6), %s216_s30, 4096  }
  0x52   : > { %908 = vsyncadd (%p1021_p6), %s216_s30, 4294963200  ;;  %v265_v0 = vlaneseq  ;;  %s666_s27 = sshll.u32 %s940_s14, 8  ;;  %v298_v1 = vld [vmem:[%s1065_s29] sm:$0xff]  ;;  %v299_v3 = vld [vmem:[%s1065_s29 + $0x8] sm:$0xff]  ;;  %s243_s7 = sand.u32 1, %s924_s10  }
  0x53   : > { %v330_v4 = vld [vmem:[%s1071_s6] sm:$0xff]  ;;  %v331_v5 = vld [vmem:[%s1071_s6 + $0x8] sm:$0xff]  ;;  %v300_v6 = vld [vmem:[%s1065_s29 + $0x10] sm:$0xff]  ;;  %s426_s21 = ssub.s32 16, %s666_s27  ;;  %s665_s8 = sshll.u32 %s243_s7, 3 }
  0x54   : > { %v1079_v2 = vshrl.u32 %v265_v0, 7  ;;  %v332_v7 = vld [vmem:[%s1071_s6 + $0x10] sm:$0xff]  ;;  %v362_v8 = vsub.f32 %v298_v1, %v330_v4  ;;  %v363_v9 = vsub.f32 %v299_v3, %v331_v5  ;;  %v301_v11 = vld [vmem:[%s1065_s29 + $0x18] sm:$0xff]  ;;  %v1089_v14 = vstv %s426_s21  ;;  %v302_v16 = vld [vmem:[%s1065_s29 + $0x20] sm:$0xff]  ;;  %s668_s12 = sshll.u32 %s940_s14, 3  ;;  %s245_s17 = scalar_lea.vmem [#allocation7], %s665_s8 }
  0x55   : > { %v333_v12 = vld [vmem:[%s1071_s6 + $0x18] sm:$0xff]  ;;  %v364_v13 = vsub.f32 %v300_v6, %v332_v7  ;;  %v334_v17 = vld [vmem:[%s1071_s6 + $0x20] sm:$0xff]  ;;  %v303_v22 = vld [vmem:[%s1065_s29 + $0x28] sm:$0xff]  ;;  %s538_s3 = scalar_lea.hbm %s1255_s2, %s668_s12  ;;  %s540_s18 = sshll.u32 %s245_s17, 4  ;;  %s541_s18 = int_to_ptr.vmem [resolvable:$true] %s540_s18 }
  0x56   : > { %v267_v10 = vadd.s32 8, %v1079_v2  ;;  %v268_v15 = vadd.s32 16, %v1079_v2  ;;  %v365_v18 = vsub.f32 %v301_v11, %v333_v12  ;;  %v394_v19 = vmul.f32 %v362_v8, %v362_v8  ;;  %v335_v23 = vld [vmem:[%s1071_s6 + $0x28] sm:$0xff]  ;;  %v304_v27 = vld [vmem:[%s1065_s29 + $0x30] sm:$0xff]  ;;  %v305_v34 = vld [vmem:[%s1065_s29 + $0x38] sm:$0xff]  ;;  %s542_s22 = sshll.u32 %s538_s3, 4  ;;  %s543_s22 = int_to_ptr.hbm [resolvable:$true] %s542_s22 }
  0x57   : > { %v395_v20 = vmul.f32 %v363_v9, %v363_v9  ;;  %v269_v21 = vadd.s32 24, %v1079_v2  ;;  %vm428_vm0 = vcmp.lt.s32.totalorder %v1079_v2, %v1089_v14  ;;  %v366_v24 = vsub.f32 %v302_v16, %v334_v17  ;;  %v336_v28 = vld [vmem:[%s1071_s6 + $0x30] sm:$0xff]  ;;  %v337_v35 = vld [vmem:[%s1071_s6 + $0x38] sm:$0xff]  ;;  %v306_v40 = vld [vmem:[%s1065_s29 + $0x40] sm:$0xff]  ;;  %s528_s14 = scalar_lea.sflag [#allocation4], %s243_s7  ;;  %s851_s23 = sshra.s32 %s543_s22, 4  ;;  %s852_s23 = int_to_ptr.hbm [resolvable:$true] %s851_s23 }
  0x58   : > { %vm429_vm1 = vcmp.lt.s32.totalorder %v267_v10, %v1089_v14  ;;  %v396_v25 = vmul.f32 %v364_v13, %v364_v13  ;;  %v270_v26 = vadd.s32 32, %v1079_v2  ;;  %vm430_vm2 = vcmp.lt.s32.totalorder %v268_v15, %v1089_v14  ;;  %v338_v41 = vld [vmem:[%s1071_s6 + $0x40] sm:$0xff]  ;;  %v307_v47 = vld [vmem:[%s1065_s29 + $0x48] sm:$0xff]  ;;  %v308_v54 = vld [vmem:[%s1065_s29 + $0x50] sm:$0xff]  ;;  %s853_s4 = scalar_lea.hbm %s852_s23, 8  ;;  %s857_s30 = scalar_lea.hbm %s1255_s2, 16 }
  0x59   : > { %v367_v29 = vsub.f32 %v303_v22, %v335_v23  ;;  %v397_v30 = vmul.f32 %v365_v18, %v365_v18  ;;  %v460_v31 = vsel %vm428_vm0, %v394_v19, 0.0  ;;  %v461_v32 = vsel %vm429_vm1, %v395_v20, 0.0  ;;  %v339_v48 = vld [vmem:[%s1071_s6 + $0x48] sm:$0xff]  ;;  %v340_v55 = vld [vmem:[%s1071_s6 + $0x50] sm:$0xff]  ;;  %v309_v61 = vld [vmem:[%s1065_s29 + $0x58] sm:$0xff]  ;;  %p854_p6 = scmp.ne.s32.totalorder %s852_s23, %s853_s4  ;;  %p858_p10 = scmp.lt.s32.totalorder %s852_s23, %s1255_s2 }
  0x5a   : > { %v271_v33 = vadd.s32 40, %v1079_v2  ;;  %vm431_vm3 = vcmp.lt.s32.totalorder %v269_v21, %v1089_v14  ;;  %v368_v36 = vsub.f32 %v304_v27, %v336_v28  ;;  %v398_v37 = vmul.f32 %v366_v24, %v366_v24  ;;  %v341_v62 = vld [vmem:[%s1071_s6 + $0x58] sm:$0xff]  ;;  %v310_v5 = vld [vmem:[%s1065_s29 + $0x60] sm:$0xff]  ;;  %v311_v12 = vld [vmem:[%s1065_s29 + $0x68] sm:$0xff]  ;;  %p859_p11 = scmp.lt.s32.totalorder %s857_s30, %s853_s4 }
  0x5b   : > { %v462_v38 = vsel %vm430_vm2, %v396_v25, 0.0  ;;  %v272_v39 = vadd.s32 48, %v1079_v2  ;;  %vm432_vm4 = vcmp.lt.s32.totalorder %v270_v26, %v1089_v14  ;;  %v492_v42 = vadd.f32 %v461_v32, %v460_v31  ;;  %v342_v6 = vld [vmem:[%s1071_s6 + $0x60] sm:$0xff]  ;;  %v343_v13 = vld [vmem:[%s1071_s6 + $0x68] sm:$0xff]  ;;  %v312_v20 = vld [vmem:[%s1065_s29 + $0x70] sm:$0xff]  ;;  %p855_p8 = pnand %p854_p6, %p1035_p12 }
  0x5c   : > { %v369_v43 = vsub.f32 %v305_v34, %v337_v35  ;;  %v399_v44 = vmul.f32 %v367_v29, %v367_v29  ;;  %v463_v45 = vsel %vm431_vm3, %v397_v30, 0.0  ;;  %v273_v46 = vadd.s32 56, %v1079_v2  ;;  %v344_v21 = vld [vmem:[%s1071_s6 + $0x70] sm:$0xff]  ;;  %v313_v27 = vld [vmem:[%s1065_s29 + $0x78] sm:$0xff]  ;;  %v314_v34 = vld [vmem:[%s1065_s29 + $0x80] sm:$0xff]  ;;  %p860_p4 = por %p859_p11, %p858_p10 }
  0x5d   : > { %vm433_vm5 = vcmp.lt.s32.totalorder %v271_v33, %v1089_v14  ;;  %v493_v49 = vadd.f32 %v492_v42, %v462_v38  ;;  %v370_v50 = vsub.f32 %v306_v40, %v338_v41  ;;  %v400_v51 = vmul.f32 %v368_v36, %v368_v36  ;;  %v345_v28 = vld [vmem:[%s1071_s6 + $0x78] sm:$0xff]  ;;  %v346_v35 = vld [vmem:[%s1071_s6 + $0x80] sm:$0xff]  ;;  %v315_v41 = vld [vmem:[%s1065_s29 + $0x88] sm:$0xff]  ;;  %p856_p9 = pneg %p855_p8 }
  0x5e   : > { %v464_v52 = vsel %vm432_vm4, %v398_v37, 0.0  ;;  %v274_v53 = vadd.s32 64, %v1079_v2  ;;  %vm434_vm6 = vcmp.lt.s32.totalorder %v272_v39, %v1089_v14  ;;  %v371_v57 = vsub.f32 %v307_v47, %v339_v48  ;;  %v347_v42 = vld [vmem:[%s1071_s6 + $0x88] sm:$0xff]  ;;  %v316_v48 = vld [vmem:[%s1065_s29 + $0x90] sm:$0xff] }
  0x5f   : > { %v494_v56 = vadd.f32 %v493_v49, %v463_v45  ;;  %v401_v58 = vmul.f32 %v369_v43, %v369_v43  ;;  %v465_v59 = vsel %vm433_vm5, %v399_v44, 0.0  ;;  %v275_v60 = vadd.s32 72, %v1079_v2  ;;  %v348_v49 = vld [vmem:[%s1071_s6 + $0x90] sm:$0xff]  ;;  %p861_p1 = pnand %p860_p4, %p856_p9 }
  0x60   : > { %vm435_vm7 = vcmp.lt.s32.totalorder %v273_v46, %v1089_v14  ;;  %v372_v0 = vsub.f32 %v308_v54, %v340_v55  ;;  %v402_v1 = vmul.f32 %v370_v50, %v370_v50  ;;  %v466_v3 = vsel %vm434_vm6, %v400_v51, 0.0  ;;  %v317_v55 = vld [vmem:[%s1065_s29 + $0x98] sm:$0xff] }
  0x61   : > { %v495_v63 = vadd.f32 %v494_v56, %v464_v52  ;;  %v276_v4 = vadd.s32 80, %v1079_v2  ;;  %vm436_vm8 = vcmp.lt.s32.totalorder %v274_v53, %v1089_v14  ;;  %v373_v8 = vsub.f32 %v309_v61, %v341_v62  ;;  %v349_v56 = vld [vmem:[%s1071_s6 + $0x98] sm:$0xff]  ;;  %v318_v62 = vld [vmem:[%s1065_s29 + $0xa0] sm:$0xff] }
  0x62   : > { %v403_v9 = vmul.f32 %v371_v57, %v371_v57  ;;  %v467_v10 = vsel %vm435_vm7, %v401_v58, 0.0  ;;  %v277_v11 = vadd.s32 88, %v1079_v2  ;;  %vm437_vm9 = vcmp.lt.s32.totalorder %v275_v60, %v1089_v14 }
  0x63   : > { %v496_v7 = vadd.f32 %v495_v63, %v465_v59  ;;  %v374_v16 = vsub.f32 %v310_v5, %v342_v6  ;;  %v404_v17 = vmul.f32 %v372_v0, %v372_v0  ;;  %v468_v18 = vsel %vm436_vm8, %v402_v1, 0.0  ;;  %v350_v63 = vld [vmem:[%s1071_s6 + $0xa0] sm:$0xff]  ;;  %v319_v6 = vld [vmem:[%s1065_s29 + $0xa8] sm:$0xff] }
  0x64   : > { %v278_v19 = vadd.s32 96, %v1079_v2  ;;  %vm438_vm10 = vcmp.lt.s32.totalorder %v276_v4, %v1089_v14  ;;  %v375_v23 = vsub.f32 %v311_v12, %v343_v13  ;;  %v405_v24 = vmul.f32 %v373_v8, %v373_v8  ;;  %v320_v13 = vld [vmem:[%s1065_s29 + $0xb0] sm:$0xff] }
  0x65   : > { %v497_v15 = vadd.f32 %v496_v7, %v466_v3  ;;  %v469_v25 = vsel %vm437_vm9, %v403_v9, 0.0  ;;  %v279_v26 = vadd.s32 104, %v1079_v2  ;;  %vm439_vm11 = vcmp.lt.s32.totalorder %v277_v11, %v1089_v14  ;;  %v351_v7 = vld [vmem:[%s1071_s6 + $0xa8] sm:$0xff] }
  0x66   : > { %v376_v30 = vsub.f32 %v312_v20, %v344_v21  ;;  %v406_v31 = vmul.f32 %v374_v16, %v374_v16  ;;  %v470_v32 = vsel %vm438_vm10, %v404_v17, 0.0  ;;  %v280_v33 = vadd.s32 112, %v1079_v2  ;;  %v321_v21 = vld [vmem:[%s1065_s29 + $0xb8] sm:$0xff] }
  0x67   : > { %v498_v22 = vadd.f32 %v497_v15, %v467_v10  ;;  %vm440_vm12 = vcmp.lt.s32.totalorder %v278_v19, %v1089_v14  ;;  %v377_v37 = vsub.f32 %v313_v27, %v345_v28  ;;  %v407_v38 = vmul.f32 %v375_v23, %v375_v23  ;;  %v352_v15 = vld [vmem:[%s1071_s6 + $0xb0] sm:$0xff]  ;;  %v322_v28 = vld [vmem:[%s1065_s29 + $0xc0] sm:$0xff] }
  0x68   : > { %v471_v39 = vsel %vm439_vm11, %v405_v24, 0.0  ;;  %v281_v40 = vadd.s32 120, %v1079_v2  ;;  %vm441_vm13 = vcmp.lt.s32.totalorder %v279_v26, %v1089_v14  ;;  %v378_v44 = vsub.f32 %v314_v34, %v346_v35  ;;  %v323_v35 = vld [vmem:[%s1065_s29 + $0xc8] sm:$0xff] }
  0x69   : > { %v499_v29 = vadd.f32 %v498_v22, %v468_v18  ;;  %v408_v45 = vmul.f32 %v376_v30, %v376_v30  ;;  %v472_v46 = vsel %vm440_vm12, %v406_v31, 0.0  ;;  %v282_v47 = vadd.s32 128, %v1079_v2  ;;  %v353_v22 = vld [vmem:[%s1071_s6 + $0xb8] sm:$0xff] }
  0x6a   : > { %vm442_vm14 = vcmp.lt.s32.totalorder %v280_v33, %v1089_v14  ;;  %v379_v51 = vsub.f32 %v315_v41, %v347_v42  ;;  %v409_v52 = vmul.f32 %v377_v37, %v377_v37  ;;  %v473_v53 = vsel %vm441_vm13, %v407_v38, 0.0  ;;  %v324_v42 = vld [vmem:[%s1065_s29 + $0xd0] sm:$0xff] }
  0x6b   : > { %v500_v36 = vadd.f32 %v499_v29, %v469_v25  ;;  %v283_v54 = vadd.s32 136, %v1079_v2  ;;  %vm443_vm15 = vcmp.lt.s32.totalorder %v281_v40, %v1089_v14  ;;  %v380_v58 = vsub.f32 %v316_v48, %v348_v49  ;;  %v354_v29 = vld [vmem:[%s1071_s6 + $0xc0] sm:$0xff]  ;;  %v325_v49 = vld [vmem:[%s1065_s29 + $0xd8] sm:$0xff] }
  0x6c   : > { %v410_v59 = vmul.f32 %v378_v44, %v378_v44  ;;  %v474_v60 = vsel %vm442_vm14, %v408_v45, 0.0  ;;  %v284_v61 = vadd.s32 144, %v1079_v2  ;;  %vm444_vm0 = vcmp.lt.s32.totalorder %v282_v47, %v1089_v14 }
  0x6d   : > { %v501_v43 = vadd.f32 %v500_v36, %v470_v32  ;;  %v381_v1 = vsub.f32 %v317_v55, %v349_v56  ;;  %v411_v3 = vmul.f32 %v379_v51, %v379_v51  ;;  %v475_v4 = vsel %vm443_vm15, %v409_v52, 0.0  ;;  %v355_v36 = vld [vmem:[%s1071_s6 + $0xc8] sm:$0xff]  ;;  %v326_v56 = vld [vmem:[%s1065_s29 + $0xe0] sm:$0xff] }
  0x6e   : > { %v285_v5 = vadd.s32 152, %v1079_v2  ;;  %vm445_vm1 = vcmp.lt.s32.totalorder %v283_v54, %v1089_v14  ;;  %v382_v9 = vsub.f32 %v318_v62, %v350_v63  ;;  %v412_v10 = vmul.f32 %v380_v58, %v380_v58  ;;  %v327_v63 = vld [vmem:[%s1065_s29 + $0xe8] sm:$0xff] }
  0x6f   : > { %v502_v50 = vadd.f32 %v501_v43, %v471_v39  ;;  %v476_v11 = vsel %vm444_vm0, %v410_v59, 0.0  ;;  %v286_v12 = vadd.s32 160, %v1079_v2  ;;  %vm446_vm2 = vcmp.lt.s32.totalorder %v284_v61, %v1089_v14  ;;  %v356_v43 = vld [vmem:[%s1071_s6 + $0xd0] sm:$0xff] }
  0x70   : > { %v383_v17 = vsub.f32 %v319_v6, %v351_v7  ;;  %v413_v18 = vmul.f32 %v381_v1, %v381_v1  ;;  %v477_v19 = vsel %vm445_vm1, %v411_v3, 0.0  ;;  %v287_v20 = vadd.s32 168, %v1079_v2  ;;  %v328_v7 = vld [vmem:[%s1065_s29 + $0xf0] sm:$0xff] }
  0x71   : > { %v503_v57 = vadd.f32 %v502_v50, %v472_v46  ;;  %vm447_vm3 = vcmp.lt.s32.totalorder %v285_v5, %v1089_v14  ;;  %v384_v24 = vsub.f32 %v320_v13, %v352_v15  ;;  %v414_v25 = vmul.f32 %v382_v9, %v382_v9  ;;  %v357_v50 = vld [vmem:[%s1071_s6 + $0xd8] sm:$0xff] }
  0x72   : > { %v478_v26 = vsel %vm446_vm2, %v412_v10, 0.0  ;;  %v288_v27 = vadd.s32 176, %v1079_v2  ;;  %vm448_vm4 = vcmp.lt.s32.totalorder %v286_v12, %v1089_v14  ;;  %v385_v31 = vsub.f32 %v321_v21, %v353_v22  ;;  %v329_v15 = vld [vmem:[%s1065_s29 + $0xf8] sm:$0xff] }
  0x73   : > { %v504_v0 = vadd.f32 %v503_v57, %v473_v53  ;;  %v415_v32 = vmul.f32 %v383_v17, %v383_v17  ;;  %v479_v33 = vsel %vm447_vm3, %v413_v18, 0.0  ;;  %v289_v34 = vadd.s32 184, %v1079_v2  ;;  %v358_v57 = vld [vmem:[%s1071_s6 + $0xe0] sm:$0xff] }
  0x74   : > { %vm449_vm5 = vcmp.lt.s32.totalorder %v287_v20, %v1089_v14  ;;  %v386_v38 = vsub.f32 %v322_v28, %v354_v29  ;;  %v416_v39 = vmul.f32 %v384_v24, %v384_v24  ;;  %v480_v40 = vsel %vm448_vm4, %v414_v25, 0.0 }
  0x75   : > { %v505_v8 = vadd.f32 %v504_v0, %v474_v60  ;;  %v290_v41 = vadd.s32 192, %v1079_v2  ;;  %vm450_vm6 = vcmp.lt.s32.totalorder %v288_v27, %v1089_v14  ;;  %v387_v45 = vsub.f32 %v323_v35, %v355_v36  ;;  %v359_v0 = vld [vmem:[%s1071_s6 + $0xe8] sm:$0xff] }
  0x76   : > { %v417_v46 = vmul.f32 %v385_v31, %v385_v31  ;;  %v481_v47 = vsel %vm449_vm5, %v415_v32, 0.0  ;;  %v291_v48 = vadd.s32 200, %v1079_v2  ;;  %vm451_vm7 = vcmp.lt.s32.totalorder %v289_v34, %v1089_v14 }
  0x77   : > { %v506_v16 = vadd.f32 %v505_v8, %v475_v4  ;;  %v388_v52 = vsub.f32 %v324_v42, %v356_v43  ;;  %v418_v53 = vmul.f32 %v386_v38, %v386_v38  ;;  %v482_v54 = vsel %vm450_vm6, %v416_v39, 0.0  ;;  %v360_v8 = vld [vmem:[%s1071_s6 + $0xf0] sm:$0xff] }
  0x78   : > { %v292_v55 = vadd.s32 208, %v1079_v2  ;;  %vm452_vm8 = vcmp.lt.s32.totalorder %v290_v41, %v1089_v14  ;;  %v389_v59 = vsub.f32 %v325_v49, %v357_v50  ;;  %v419_v60 = vmul.f32 %v387_v45, %v387_v45 }
  0x79   : > { %v507_v23 = vadd.f32 %v506_v16, %v476_v11  ;;  %v483_v61 = vsel %vm451_vm7, %v417_v46, 0.0  ;;  %v293_v62 = vadd.s32 216, %v1079_v2  ;;  %vm453_vm9 = vcmp.lt.s32.totalorder %v291_v48, %v1089_v14  ;;  %v361_v16 = vld [vmem:[%s1071_s6 + $0xf8] sm:$0xff] }
  0x7a   : > { %v390_v3 = vsub.f32 %v326_v56, %v358_v57  ;;  %v420_v4 = vmul.f32 %v388_v52, %v388_v52  ;;  %v484_v5 = vsel %vm452_vm8, %v418_v53, 0.0  ;;  %v294_v6 = vadd.s32 224, %v1079_v2 }
  0x7b   : > { %v508_v30 = vadd.f32 %v507_v23, %v477_v19  ;;  %vm454_vm10 = vcmp.lt.s32.totalorder %v292_v55, %v1089_v14  ;;  %v391_v10 = vsub.f32 %v327_v63, %v359_v0  ;;  %v421_v11 = vmul.f32 %v389_v59, %v389_v59 }
  0x7c   : > { %v485_v12 = vsel %vm453_vm9, %v419_v60, 0.0  ;;  %v295_v13 = vadd.s32 232, %v1079_v2  ;;  %vm455_vm11 = vcmp.lt.s32.totalorder %v293_v62, %v1089_v14  ;;  %v392_v18 = vsub.f32 %v328_v7, %v360_v8 }
  0x7d   : > { %v509_v37 = vadd.f32 %v508_v30, %v478_v26  ;;  %v422_v19 = vmul.f32 %v390_v3, %v390_v3  ;;  %v486_v20 = vsel %vm454_vm10, %v420_v4, 0.0  ;;  %v296_v21 = vadd.s32 240, %v1079_v2 }
  0x7e   : > { %vm456_vm12 = vcmp.lt.s32.totalorder %v294_v6, %v1089_v14  ;;  %v393_v23 = vsub.f32 %v329_v15, %v361_v16  ;;  %v423_v24 = vmul.f32 %v391_v10, %v391_v10  ;;  %v487_v25 = vsel %vm455_vm11, %v421_v11, 0.0 }
  0x7f   : > { %v510_v44 = vadd.f32 %v509_v37, %v479_v33  ;;  %v297_v26 = vadd.s32 248, %v1079_v2  ;;  %vm457_vm13 = vcmp.lt.s32.totalorder %v295_v13, %v1089_v14  ;;  %v424_v28 = vmul.f32 %v392_v18, %v392_v18 }
  0x80   : > { %v488_v29 = vsel %vm456_vm12, %v422_v19, 0.0  ;;  %vm458_vm14 = vcmp.lt.s32.totalorder %v296_v21, %v1089_v14  ;;  %v425_v31 = vmul.f32 %v393_v23, %v393_v23  ;;  %v489_v32 = vsel %vm457_vm13, %v423_v24, 0.0 }
  0x81   : > { %v511_v51 = vadd.f32 %v510_v44, %v480_v40  ;;  %vm459_vm15 = vcmp.lt.s32.totalorder %v297_v26, %v1089_v14  ;;  %v490_v34 = vsel %vm458_vm14, %v424_v28, 0.0 }
  0x82   : > { %v491_v2 = vsel %vm459_vm15, %v425_v31, 0.0 }
  0x83   : > { %v512_v58 = vadd.f32 %v511_v51, %v481_v47 }
  0x85   : > { %v513_v1 = vadd.f32 %v512_v58, %v482_v54 }
  0x87   : > { %v514_v9 = vadd.f32 %v513_v1, %v483_v61 }
  0x89   : > { %v515_v17 = vadd.f32 %v514_v9, %v484_v5 }
  0x8b   : > { %v516_v22 = vadd.f32 %v515_v17, %v485_v12 }
  0x8d   : > { %v517_v27 = vadd.f32 %v516_v22, %v486_v20 }
  0x8f   : > { %v518_v30 = vadd.f32 %v517_v27, %v487_v25 }
  0x91   : > { %v519_v33 = vadd.f32 %v518_v30, %v488_v29 }
  0x93   : > { %v520_v35 = vadd.f32 %v519_v33, %v489_v32 }
  0x95   : > { %v521_v36 = vadd.f32 %v520_v35, %v490_v34 }
  0x97   : > { %v522_v37 = vadd.f32 %v521_v36, %v491_v2 }
  0x99   : > { %526 = vst [vmem:[%s245_s17] sm:$0xff] %v522_v37 }
  0x9a   : > { %864 = shalt.err (!%p861_p1)
}
  0x9b   : > { %675 = dma.vmem_to_hbm [thread:$0]  (%p1035_p12), %s541_s18, 128, %s543_s22, %s528_s14  }
  0x9c PF: > { %s554_s21 = sand.u32 1, %s920_s9   ;;  %p678_p2 = pnand %p647_p0, %p1039_p13 }
  0x9d   : > { %s555_s7 = scalar_lea.sflag [#allocation4], %s554_s21 }
  0x9e   : > { %p679_p3 = pneg %p678_p2 }
  0xa0   : > { %910 = dma.done.wait (%p679_p3), %s555_s7, 128  }
  0xa1   : > { %912 = vsyncadd (%p679_p3), %s555_s7, 4294967168  ;;  %s21_s16 = sadd.s32 1, %s948_s16   ;;  %s1260_s9 = smov %s924_s10 }
  0xa2   : > { %p18_p5 = scmp.ge.s32.totalorder %s21_s16, 4   ;;  %s1261_s10 = smov %s928_s11 }
  0xa3   : > { %s1262_s11 = smov %s1029_s24  ;;  %s1263_s12 = smov %s936_s13 }
  0xa4   : > { %s1243_s13 = smov 0   ;;  %s1264_s14 = smov %s944_s15 }
  0xa5   : > { %s1265_s15 = smov %s1267_s19  ;;  %20 = sbr.rel (!%p18_p5) target bundleno = 9 (0x9), region = 90 }
  0xaa   :  { %561 = vsyncpa [#allocation3], 1 }
  0xab   :  { %563 = vsyncpa [#allocation3 + $0x1], 1 }
  0xac   :  { %564 = vsyncpa [#allocation6], 1 }
  0xad   :  { %566 = vsyncpa [#allocation6 + $0x1], 1 }
  0xae   :  { %567 = vsyncpa [#allocation4], 1 }
  0xaf   :  { %569 = vsyncpa [#allocation4 + $0x1], 1 }

</bundles_post_ra>
